<compile_context>
chip_gen: v7x
topology: tpu7x:2x2x1
jax: 0.10.0
libtpu: 0.0.40
codegen_flags: <defaults>
</compile_context>

<pallas_src>
import functools

import jax
import jax.numpy as jnp
from jax.experimental import pallas as pl
from jax.experimental.pallas import tpu as pltpu


def _round_up(x, m):
    return (x + m - 1) // m * m


def _mlp_kernel(x_ref, w13_ref, w2_ref, o_ref, acc_ref, *, tn):
    # x_ref:   (tm, dim)      token tile (resident across the k axis)
    # w13_ref: (dim, 2*tn)    slab k = [W1^T slab | W3^T slab]
    # w2_ref:  (tn, dim)      slab k of W2^T
    # o_ref:   (tm, dim)      output tile (written on the last k step)
    # acc_ref: (tm, dim) f32  accumulator over the intermediate dimension
    k = pl.program_id(1)

    @pl.when(k == 0)
    def _():
        acc_ref[...] = jnp.zeros_like(acc_ref)

    x = x_ref[...]
    # Fused gate/up projection: one MXU matmul for both W1 and W3.
    h = jnp.dot(x, w13_ref[...], preferred_element_type=jnp.float32)  # (tm, 2*tn)
    h1 = h[:, :tn]
    h3 = h[:, tn:]
    g = (h1 * jax.nn.sigmoid(h1)) * h3                                # silu(w1 x) * w3 x
    acc_ref[...] += jnp.dot(g.astype(w2_ref.dtype), w2_ref[...],
                            preferred_element_type=jnp.float32)       # w2(...)

    @pl.when(k == pl.num_programs(1) - 1)
    def _():
        o_ref[...] = acc_ref[...].astype(o_ref.dtype)


def prepare_mlp_weights(w1, w2, w3, *, tn=256, compute_dtype=None):
    """One-time weight prep (do at weight-load time, NOT per forward call).

    w1, w3: [inter, dim], w2: [dim, inter]  (PyTorch Linear layout).
    Returns (w13t, w2t, tn_eff):
      w13t: [dim, 2*inter_p] -- slab k (width 2*tn) = [W1^T cols k | W3^T cols k]
      w2t:  [inter_p, dim]
    with inter_p = inter rounded up to a multiple of tn_eff (zero padded;
    padded columns contribute exactly zero through silu(0)*0).
    """
    inter, dim = w1.shape
    if compute_dtype is not None:
        w1 = w1.astype(compute_dtype)
        w2 = w2.astype(compute_dtype)
        w3 = w3.astype(compute_dtype)

    tn_eff = min(tn, inter)
    inter_p = _round_up(inter, tn_eff)
    pad = inter_p - inter
    if pad:
        w1 = jnp.pad(w1, ((0, pad), (0, 0)))
        w3 = jnp.pad(w3, ((0, pad), (0, 0)))
        w2 = jnp.pad(w2, ((0, 0), (0, pad)))

    w1t = w1.T  # (dim, inter_p)
    w3t = w3.T  # (dim, inter_p)
    w2t = w2.T  # (inter_p, dim)
    nk = inter_p // tn_eff
    # Interleave at slab granularity so a single (dim, 2*tn) BlockSpec covers both.
    w13t = jnp.concatenate(
        [w1t.reshape(dim, nk, tn_eff), w3t.reshape(dim, nk, tn_eff)], axis=2
    ).reshape(dim, 2 * inter_p)
    return w13t, w2t, tn_eff


def mlp_pallas(x, w13t, w2t, *, tn, tm=256):
    """x: [..., dim]; w13t: [dim, 2*inter_p]; w2t: [inter_p, dim] (from prepare_mlp_weights)."""
    orig_shape = x.shape
    dim = orig_shape[-1]
    inter_p = w2t.shape[0]
    assert w13t.shape == (dim, 2 * inter_p)
    assert inter_p % tn == 0

    compute_dtype = w13t.dtype
    out_dtype = x.dtype
    x2d = x.reshape(-1, dim).astype(compute_dtype)
    M = x2d.shape[0]

    # Token tile: large for MXU occupancy, shrunk/padded for small inputs.
    tm_eff = min(tm, _round_up(M, 8))
    M_p = _round_up(M, tm_eff)
    if M_p != M:
        x2d = jnp.pad(x2d, ((0, M_p - M), (0, 0)))

    grid = (M_p // tm_eff, inter_p // tn)

    itemsize = jnp.dtype(compute_dtype).itemsize
    out_itemsize = jnp.dtype(out_dtype).itemsize
    tile_bytes = (
        2 * (tm_eff * dim * itemsize)        # x tiles (double-buffered)
        + 2 * (dim * 2 * tn * itemsize)      # w13 slabs
        + 2 * (tn * dim * itemsize)          # w2 slabs
        + 2 * (tm_eff * dim * out_itemsize)  # out tiles
        + tm_eff * dim * 4                   # f32 accumulator
    )
    vmem_limit = int(min(100 * 2**20, max(32 * 2**20, tile_bytes * 5 // 4)))

    cost = pl.CostEstimate(
        flops=6 * M_p * dim * inter_p,
        transcendentals=M_p * inter_p,
        bytes_accessed=(w13t.size + w2t.size) * itemsize
        + M_p * dim * itemsize
        + M_p * dim * out_itemsize,
    )

    out = pl.pallas_call(
        functools.partial(_mlp_kernel, tn=tn),
        out_shape=jax.ShapeDtypeStruct((M_p, dim), out_dtype),
        grid_spec=pltpu.PrefetchScalarGridSpec(
            num_scalar_prefetch=0,
            grid=grid,
            in_specs=[
                pl.BlockSpec((tm_eff, dim), lambda i, k: (i, 0)),
                pl.BlockSpec((dim, 2 * tn), lambda i, k: (0, k)),
                pl.BlockSpec((tn, dim), lambda i, k: (k, 0)),
            ],
            out_specs=pl.BlockSpec((tm_eff, dim), lambda i, k: (i, 0)),
            scratch_shapes=[pltpu.VMEM((tm_eff, dim), jnp.float32)],
        ),
        compiler_params=pltpu.CompilerParams(
            dimension_semantics=("parallel", "arbitrary"),
            vmem_limit_bytes=vmem_limit,
        ),
        cost_estimate=cost,
    )(x2d, w13t, w2t)

    if M_p != M:
        out = out[:M]
    return out.reshape(orig_shape)


def mlp_ref(x, w1, w2, w3):
    h1 = x @ w1.T
    h3 = x @ w3.T
    g = (h1 * jax.nn.sigmoid(h1)) * h3
    return g @ w2.T


if __name__ == "__main__":
    batch, seq, dim, inter_dim = 2, 8, 32, 64  # small shapes consistent with MLP(dim, inter_dim)

    key = jax.random.PRNGKey(0)
    kx, k1, k2, k3 = jax.random.split(key, 4)
    x = jax.random.normal(kx, (batch, seq, dim), dtype=jnp.float32)
    # deterministic parameters (PyTorch layout: [out_features, in_features])
    w1 = jax.random.normal(k1, (inter_dim, dim), dtype=jnp.float32) * 0.05
    w2 = jax.random.normal(k2, (dim, inter_dim), dtype=jnp.float32) * 0.05
    w3 = jax.random.normal(k3, (inter_dim, dim), dtype=jnp.float32) * 0.05

    y_ref = mlp_ref(x, w1, w2, w3)

    # f32 path: bit-for-bit-ish vs reference
    w13t, w2t, tn = prepare_mlp_weights(w1, w2, w3, tn=256, compute_dtype=None)
    y = jax.block_until_ready(mlp_pallas(x, w13t, w2t, tn=tn, tm=256))
    assert y.shape == x.shape
    assert jnp.allclose(y, y_ref, atol=1e-5, rtol=1e-5), "f32 mismatch vs reference"

    # bf16 operands + f32 accumulation (production / MXU-peak path)
    w13t_bf, w2t_bf, tn_bf = prepare_mlp_weights(
        w1, w2, w3, tn=256, compute_dtype=jnp.bfloat16)
    y_bf = jax.block_until_ready(mlp_pallas(x, w13t_bf, w2t_bf, tn=tn_bf, tm=256))
    assert y_bf.shape == x.shape
    assert jnp.allclose(y_bf.astype(jnp.float32), y_ref, atol=3e-2, rtol=3e-2), \
        "bf16 mismatch vs reference"

    print("KERNEL_OK")
</pallas_src>

<mosaic_0001>
module attributes {stable_mosaic.version = 11 : i64} {
  func.func @_mlp_kernel(%arg0: i32, %arg1: i32, %arg2: memref<16x32xf32, #tpu.memory_space<vmem>>, %arg3: memref<32x128xf32, #tpu.memory_space<vmem>>, %arg4: memref<64x32xf32, #tpu.memory_space<vmem>>, %arg5: memref<16x32xf32, #tpu.memory_space<vmem>>, %arg6: memref<16x32xf32, #tpu.memory_space<vmem>>) attributes {dimension_semantics = [#tpu.dimension_semantics<parallel>, #tpu.dimension_semantics<arbitrary>], iteration_bounds = array<i64: 1, 1>, scalar_prefetch = 0 : i64, scratch_operands = 1 : i64, tpu.core_type = #tpu.core_type<tc>, window_params = [{transform_indices = @transform_0, window_bounds = array<i64: 16, 32>}, {transform_indices = @transform_1, window_bounds = array<i64: 32, 128>}, {transform_indices = @transform_2, window_bounds = array<i64: 64, 32>}, {transform_indices = @transform_3, window_bounds = array<i64: 16, 32>}]} {
    %c0_i32 = arith.constant 0 : i32
    %0 = arith.cmpi eq, %arg1, %c0_i32 : i32
    %1 = arith.extui %0 : i1 to i32
    %c0_i32_0 = arith.constant 0 : i32
    %2 = arith.cmpi ne, %1, %c0_i32_0 : i32
    scf.if %2 {
      %cst_14 = arith.constant 0.000000e+00 : f32
      %23 = vector.broadcast %cst_14 : f32 to vector<16x32xf32>
      %c0_15 = arith.constant 0 : index
      %c0_16 = arith.constant 0 : index
      %24 = vector.load %arg6[%c0_15, %c0_16] : memref<16x32xf32, #tpu.memory_space<vmem>>, vector<16x32xf32>
      tpu.vector_store %arg6[%c0_15, %c0_16], %23 {strides = array<i32>} : memref<16x32xf32, #tpu.memory_space<vmem>>, vector<16x32xf32>,
    } else {
    }
    %c0 = arith.constant 0 : index
    %c0_1 = arith.constant 0 : index
    %3 = vector.load %arg2[%c0, %c0_1] : memref<16x32xf32, #tpu.memory_space<vmem>>, vector<16x32xf32>
    %c0_2 = arith.constant 0 : index
    %c0_3 = arith.constant 0 : index
    %4 = vector.load %arg3[%c0_2, %c0_3] : memref<32x128xf32, #tpu.memory_space<vmem>>, vector<32x128xf32>
    %cst = arith.constant dense<0.000000e+00> : vector<16x128xf32>
    %5 = tpu.matmul %3, %4, %cst {dimension_numbers = #tpu.dot_dimension_numbers<[1], [0], [0], [1], [0, 0, 1, 1], [], []>} : vector<16x32xf32>, vector<32x128xf32>, vector<16x128xf32> -> vector<16x128xf32>
    %6 = vector.extract_strided_slice %5 {offsets = [0, 0], sizes = [16, 64], strides = [1, 1]} : vector<16x128xf32> to vector<16x64xf32>
    %7 = vector.extract_strided_slice %5 {offsets = [0, 64], sizes = [16, 64], strides = [1, 1]} : vector<16x128xf32> to vector<16x64xf32>
    %8 = arith.negf %6 : vector<16x64xf32>
    %9 = math.exp %8 : vector<16x64xf32>
    %cst_4 = arith.constant 1.000000e+00 : f32
    %10 = vector.broadcast %cst_4 : f32 to vector<16x64xf32>
    %11 = arith.addf %10, %9 : vector<16x64xf32>
    %12 = arith.divf %10, %11 : vector<16x64xf32>
    %13 = arith.mulf %6, %12 : vector<16x64xf32>
    %14 = arith.mulf %13, %7 : vector<16x64xf32>
    %c0_5 = arith.constant 0 : index
    %c0_6 = arith.constant 0 : index
    %15 = vector.load %arg6[%c0_5, %c0_6] : memref<16x32xf32, #tpu.memory_space<vmem>>, vector<16x32xf32>
    %c0_7 = arith.constant 0 : index
    %c0_8 = arith.constant 0 : index
    %16 = vector.load %arg4[%c0_7, %c0_8] : memref<64x32xf32, #tpu.memory_space<vmem>>, vector<64x32xf32>
    %cst_9 = arith.constant dense<0.000000e+00> : vector<16x32xf32>
    %17 = tpu.matmul %14, %16, %cst_9 {dimension_numbers = #tpu.dot_dimension_numbers<[1], [0], [0], [1], [0, 0, 1, 1], [], []>} : vector<16x64xf32>, vector<64x32xf32>, vector<16x32xf32> -> vector<16x32xf32>
    %18 = arith.addf %15, %17 : vector<16x32xf32>
    %c0_10 = arith.constant 0 : index
    %c0_11 = arith.constant 0 : index
    %19 = vector.load %arg6[%c0_10, %c0_11] : memref<16x32xf32, #tpu.memory_space<vmem>>, vector<16x32xf32>
    tpu.vector_store %arg6[%c0_10, %c0_11], %18 {strides = array<i32>} : memref<16x32xf32, #tpu.memory_space<vmem>>, vector<16x32xf32>,
    %c0_i32_12 = arith.constant 0 : i32
    %20 = arith.cmpi eq, %arg1, %c0_i32_12 : i32
    %21 = arith.extui %20 : i1 to i32
    %c0_i32_13 = arith.constant 0 : i32
    %22 = arith.cmpi ne, %21, %c0_i32_13 : i32
    scf.if %22 {
      %c0_14 = arith.constant 0 : index
      %c0_15 = arith.constant 0 : index
      %23 = vector.load %arg6[%c0_14, %c0_15] : memref<16x32xf32, #tpu.memory_space<vmem>>, vector<16x32xf32>
      %c0_16 = arith.constant 0 : index
      %c0_17 = arith.constant 0 : index
      %24 = vector.load %arg5[%c0_16, %c0_17] : memref<16x32xf32, #tpu.memory_space<vmem>>, vector<16x32xf32>
      tpu.vector_store %arg5[%c0_16, %c0_17], %23 {strides = array<i32>} : memref<16x32xf32, #tpu.memory_space<vmem>>, vector<16x32xf32>,
    } else {
    }
    return
  }
  func.func @transform_0(%arg0: i32, %arg1: i32) -> (i32, i32) {
    %c0_i32 = arith.constant 0 : i32
    %c0_i32_0 = arith.constant 0 : i32
    return %arg0, %c0_i32 : i32, i32
  }
  func.func @transform_1(%arg0: i32, %arg1: i32) -> (i32, i32) {
    %c0_i32 = arith.constant 0 : i32
    %c0_i32_0 = arith.constant 0 : i32
    return %c0_i32, %arg1 : i32, i32
  }
  func.func @transform_2(%arg0: i32, %arg1: i32) -> (i32, i32) {
    %c0_i32 = arith.constant 0 : i32
    %c0_i32_0 = arith.constant 0 : i32
    return %arg1, %c0_i32 : i32, i32
  }
  func.func @transform_3(%arg0: i32, %arg1: i32) -> (i32, i32) {
    %c0_i32 = arith.constant 0 : i32
    %c0_i32_0 = arith.constant 0 : i32
    return %arg0, %c0_i32 : i32, i32
  }
}

</mosaic_0001>

<bundles_post_ra>
// kernel: tpu_custom_call.1
= control target key start
LH: loop header
LB: loop body
LE: loop exit
PB: predicated region body
PF: predicated region fallthrough
CT: control target
= control target key end

     0   :  { %vm19_vm0 = vcmask 261120   ;;  %s453_s0 = inlined_call_operand.vmem [shape: f32[16,32], index: 0, kind: input, shape index: {}]   ;;  %s454_s1 = inlined_call_operand.vmem [shape: f32[32,128], index: 1, kind: input, shape index: {}]   ;;  %s455_s2 = inlined_call_operand.vmem [shape: f32[64,32], index: 2, kind: input, shape index: {}]   ;;  %s456_s3 = inlined_call_operand.hbm [shape: f32[16,32], index: 3, kind: output, shape index: {}]  }
   0x1   :  { %v24_v0 = vld [vmem:[%s454_s1] sm:$0xff]  ;;  %v25_v1 = vld [vmem:[%s454_s1 + $0x8] sm:$0xff]  ;;  %v26_v2 = vld [vmem:[%s454_s1 + $0x10] sm:$0xff] }
   0x2   :  { %v305_v3 = vpack.c.bf16 %v25_v1, %v24_v0  ;;  %v27_v4 = vld [vmem:[%s454_s1 + $0x18] sm:$0xff]  ;;  %v22_v5 = vld [vmem:[%s453_s0] sm:$0xff] }
   0x3   :  { %v309_v6 = vpack.c.bf16 %v27_v4, %v26_v2  ;;  %283 = vmatprep.mubr.msk.f32.mxu0 %vm19_vm0, %v22_v5 }
   0x4   :  { %8 = vsyncpa [#allocation4], 0  ;;  %306 = vmatprep.subr.bf16.mxu0 %v305_v3  ;;  %v23_v7 = vld [vmem:[%s453_s0 + $0x8] sm:$0xff]  ;;  %v136_v8 = vld [vmem:[%s455_s2] sm:$0xff]  ;;  %v366_v20 = vmov 0.0   ;;  %s367_s11 = smov 64  }
   0x5   :  { %308 = vmatpush3.bf16.msra.mxu0 %v305_v3  ;;  %v137_v9 = vld [vmem:[%s455_s2 + $0x8] sm:$0xff]  ;;  %v138_v10 = vld [vmem:[%s455_s2 + $0x10] sm:$0xff]  ;;  %v139_v12 = vld [vmem:[%s455_s2 + $0x18] sm:$0xff]  ;;  %21 = vst.msk [vmem:[#allocation2 + $0x8] sm:$0xff] %vm19_vm0, %v366_v20  ;;  %vm144_vm1 = vcmask 523264  }
   0x6   :  { %310 = vmatprep.subr.bf16.mxu0 %v309_v6  ;;  %v313_v11 = vpack.c.bf16 %v137_v9, %v136_v8  ;;  %v317_v13 = vpack.c.bf16 %v139_v12, %v138_v10  ;;  %v140_v14 = vld [vmem:[%s455_s2 + $0x20] sm:$0xff]  ;;  %v141_v15 = vld [vmem:[%s455_s2 + $0x28] sm:$0xff]  ;;  %v142_v17 = vld [vmem:[%s455_s2 + $0x30] sm:$0xff]  ;;  %20 = vst.msk [vmem:[#allocation2] sm:$0xff] %vm19_vm0, %v366_v20 }
   0x7   :  { %v321_v16 = vpack.c.bf16 %v141_v15, %v140_v14  ;;  %v143_v18 = vld [vmem:[%s455_s2 + $0x38] sm:$0xff]  ;;  %s368_s2 = smov [#allocation3]  }
   0x8   :  { %314 = vmatprep.subr.bf16.mxu1 %v313_v11  ;;  %v325_v19 = vpack.c.bf16 %v143_v18, %v142_v17  ;;  %s242_s12 = sshll.u32 %s368_s2, 4  ;;  %s243_s12 = int_to_ptr.vmem [resolvable:$true] %s242_s12 }
   0x9   :  { %312 = vmatpush3.bf16.msra.mxu0 %v309_v6  ;;  %316 = vmatpush3.bf16.msra.mxu1 %v313_v11  ;;  %s342_s13 = scalar_lea.vmem %s243_s12, 256  ;;  %p347_p1 = scmp.lt.s32.totalorder %s243_s12, %s243_s12 }
   0xa   :  { %318 = vmatprep.subr.bf16.mxu1 %v317_v13  ;;  %p343_p0 = scmp.ne.s32.totalorder %s243_s12, %s342_s13  ;;  %p348_p2 = scmp.lt.s32.totalorder %s342_s13, %s342_s13 }
   0xc   :  { %284 = vmatmul.mubr.msk.f32.vlgmr.msra.gmra.mrb[0].mxu0 %vm19_vm0, %v23_v7  ;;  %v135_v37 = vld [vmem:[#allocation2 + $0x8] sm:$0xff]  ;;  %p349_p3 = por %p348_p2, %p347_p1 }
   0xd   :  { %320 = vmatpush3.bf16.msra.mxu1 %v317_v13  ;;  %v134_v38 = vld [vmem:[#allocation2] sm:$0xff] }
   0xe   :  { %322 = vmatprep.subr.bf16.mxu1 %v321_v16  ;;  %p350_p4 = pnand %p349_p3, %p343_p0 }
  0x11   :  { %324 = vmatpush3.bf16.msra.mxu1 %v321_v16 }
  0x12   :  { %326 = vmatprep.subr.bf16.mxu1 %v325_v19 }
  0x15   :  { %328 = vmatpush3.bf16.msra.mxu1 %v325_v19 }
  0xdf   :  { %v285_v21 = vpop.f32.mrb[0].mxu0 }
  0xe0   :  { %v101_v22 = vpop.f32.mrb[1].mxu0  ;;  %v256_v24 = vmul.f32 -1.442695, %v285_v21 }
  0xe1   :  { %126 = vrot.lane.b32.xlu0 %v101_v22, %s367_s11  ;;  %v255_v23 = vmul.f32 -1.442695, %v101_v22 }
  0xe3   :  { %334 = vpow2.f32 %v255_v23 }
  0xe4   :  { %336 = vpow2.f32 %v256_v24 }
  0xe5   :  { %128 = vrot.lane.b32.xlu0 %v285_v21, %s367_s11 }
  0xed   :  { %v335_v25 = vpop.eup %334 }
  0xee   :  { %v116_v26 = vadd.f32 1.0, %v335_v25  ;;  %v337_v27 = vpop.eup %336 }
  0xef   :  { %v117_v28 = vadd.f32 1.0, %v337_v27 }
  0xf0   :  { %338 = vrcp.f32 %v116_v26 }
  0xf1   :  { %340 = vrcp.f32 %v117_v28 }
  0xfa   :  { %v339_v29 = vpop.eup %338 }
  0xfb   :  { %v122_v30 = vmul.f32 %v339_v29, %v101_v22  ;;  %v341_v31 = vpop.eup %340 }
  0xfc   :  { %v123_v34 = vmul.f32 %v341_v31, %v285_v21 }
 0x153   :  { %v127_v32 = vpop.permute.xlu0 %126 }
 0x154   :  { %v132_v33 = vmul.f32 %v127_v32, %v122_v30 }
 0x156   :  { %302 = vmatprep.mubr.msk.f32.mxu1 %vm144_vm1, %v132_v33 }
 0x157   :  { %v129_v35 = vpop.permute.xlu0 %128 }
 0x158   :  { %v133_v36 = vmul.f32 %v129_v35, %v123_v34 }
 0x15a   :  { %303 = vmatmul.mubr.msk.f32.vlgmr.msra.gmra.mrb[0].mxu1 %vm144_vm1, %v133_v36 }
 0x22d   :  { %v304_v39 = vpop.f32.mrb[0].mxu1 }
 0x22e   :  { %v227_v40 = vadd.f32 %v304_v39, %v135_v37  ;;  %v217_v41 = vpop.f32.mrb[1].mxu1 }
 0x22f   :  { %v226_v42 = vadd.f32 %v217_v41, %v134_v38 }
 0x230   :  { %229 = vst.msk [vmem:[#allocation2 + $0x8] sm:$0xff] %vm19_vm0, %v227_v40 }
 0x231   :  { %228 = vst.msk [vmem:[#allocation2] sm:$0xff] %vm19_vm0, %v226_v42 }
 0x237   :  { %v234_v43 = vld [vmem:[#allocation2 + $0x8] sm:$0xff] }
 0x238   :  { %v233_v44 = vld [vmem:[#allocation2] sm:$0xff]  ;;  %236 = vst.msk [vmem:[#allocation3 + $0x8] sm:$0xff] %vm19_vm0, %v234_v43 }
 0x239   :  { %235 = vst.msk [vmem:[#allocation3] sm:$0xff] %vm19_vm0, %v233_v44 }
 0x23a   :  { %353 = shalt.err (!%p350_p4)
}
 0x23b   :  { %s354_s16 = scalar_lea.hbm %s456_s3, 256 }
 0x23c   :  { %p355_p5 = scmp.ne.s32.totalorder %s456_s3, %s354_s16  ;;  %p358_p6 = scmp.lt.u32.totalorder %s354_s16, %s456_s3 }
 0x23e   :  { %p360_p7 = pnand %p358_p6, %p355_p5 }
 0x240   :  { %363 = shalt.err (!%p360_p7)
}
 0x241   :  { %s369_s21 = smov 128   ;;  %s370_s22 = smov 8  }
 0x242   :  { %248 = dma.vmem_to_hbm [thread:$0]  %s243_s12, 256, %s456_s3, [#allocation4], %s369_s21, %s369_s21, %s370_s22  }
 0x243   :  { %364 = dma.done.wait [#allocation4], 256  }
 0x244   :  { %365 = vsyncadd [#allocation4], 4294967040 }
 0x245   :  { %252 = vsyncpa [#allocation4], 1 }

</bundles_post_ra>
